<compile_context>
chip_gen: v5e
topology: v5e:2x2
jax: 0.10.0
libtpu: 0.0.40
codegen_flags: <defaults>
</compile_context>

<pallas_src>
import math

import jax
import jax.numpy as jnp
from jax.experimental import pallas as pl
from jax.experimental.pallas import tpu as pltpu


def _cdiv(a: int, b: int) -> int:
    return -(-a // b)


def _add_pe_kernel(x_ref, pe_ref, o_ref):
    # x_ref: (b_tile, r_tile, L), pe_ref: (1, r_tile, L) -> broadcast add over batch.
    o_ref[...] = x_ref[...] + pe_ref[...]


def make_positional_encoding(embed_dim: int, seq_len: int, dtype=jnp.float32):
    """Deterministically build the sinusoidal PE table, shape (1, seq_len, embed_dim)."""
    pos = jnp.arange(seq_len, dtype=jnp.float32)[:, None]                 # (S, 1)
    div_term = jnp.exp(
        jnp.arange(0, embed_dim, 2, dtype=jnp.float32)
        * (-math.log(10000.0) / embed_dim)
    )                                                                     # (ceil(E/2),)
    angles = pos * div_term                                               # (S, E/2)
    pe = jnp.zeros((seq_len, embed_dim), dtype=jnp.float32)
    pe = pe.at[:, 0::2].set(jnp.sin(angles))
    pe = pe.at[:, 1::2].set(jnp.cos(angles[:, : embed_dim // 2]))
    return pe[None].astype(dtype)                                         # (1, S, E)


def _choose_lane_width(N: int, E: int) -> int:
    """Pick a lane width L (multiple of 128) that divides S*E; fall back to full E."""
    for cand in (2048, 1024, 512, 256, 128):
        if N % cand == 0:
            return cand
    # TODO(synk): for S*E not a multiple of 128 one could pad E up to 128 in the
    # wrapper and slice; the full-E block used here is always legal (block == dim)
    # but uses masked stores when E is not lane-aligned.
    return E


def positional_encoding_forward(
    x: jax.Array,
    pe: jax.Array,
    *,
    target_tile_bytes: int | None = None,
    donate_x: bool = False,
) -> jax.Array:
    """x: (B, S, E), pe: (1, S, E) -> (B, S, E); x + pe broadcast over batch."""
    B, S, E = x.shape
    assert pe.shape == (1, S, E)
    pe = pe.astype(x.dtype)

    itemsize = jnp.dtype(x.dtype).itemsize
    sub = max(8, 32 // itemsize)          # sublane packing: 8 f32, 16 bf16, 32 int8/fp8

    # ---- lane-dense view: fold (S, E) -> (R, L) with L a multiple of 128 if possible.
    N = S * E
    L = _choose_lane_width(N, E)
    R = N // L
    xv = x.reshape(B, R, L)
    pev = pe.reshape(1, R, L)

    # ---- chip-aware tile budget + explicit VMEM limit.
    try:
        hw_vmem = int(pltpu.get_tpu_info().vmem_capacity_bytes)
    except Exception:
        hw_vmem = 64 << 20                # assume the smallest (v7x per-core) if unknown
    if target_tile_bytes is None:
        # x-tile budget: big enough to amortize ~0.35 us/step grid overhead (v7x),
        # small enough that 2 buffers x (x + out + pe) stays well under VMEM.
        target_tile_bytes = max(1 << 20, min(8 << 20, hw_vmem // 10))

    row_bytes = L * itemsize
    rows_budget = max(sub, target_tile_bytes // row_bytes)   # rows (incl. batch) per x tile

    # ---- fold batch into the block whenever a sub-aligned per-batch chunk fits.
    if B * min(R, sub) <= rows_budget:
        b_tile = B
        per_b = rows_budget // B
    else:
        b_tile = 1
        per_b = rows_budget
    if per_b >= R:
        r_tile = R                        # full row extent (always a legal block dim)
    else:
        r_tile = max(sub, (per_b // sub) * sub)

    n_r = _cdiv(R, r_tile)                # partial last block is fine
    n_b = B // b_tile

    # ---- megacore: ensure >= 2 grid steps on non-trivial problems (v7x has 2 TCs,
    #      and a single-step grid cannot pipeline DMA with compute).
    total_bytes = B * N * itemsize
    if n_r * n_b == 1 and R >= 2 * sub and total_bytes > (1 << 20):
        r_tile = sub * _cdiv(_cdiv(R, 2), sub)
        n_r = _cdiv(R, r_tile)

    # ---- explicit VMEM budget: 2 buffers x (x + out + pe) tiles + headroom.
    x_tile_bytes = b_tile * r_tile * L * itemsize
    pe_tile_bytes = r_tile * L * itemsize
    need = 2 * (2 * x_tile_bytes + pe_tile_bytes)
    vmem_limit = int(min(hw_vmem, max(need + need // 2 + (4 << 20), 16 << 20)))

    # Grid: row-tile axis OUTER, batch axis INNER.  pe's block index depends only on
    # the outer axis, so across consecutive (inner) steps its DMA is elided.
    grid = (n_r, n_b)

    out = pl.pallas_call(
        _add_pe_kernel,
        out_shape=jax.ShapeDtypeStruct((B, R, L), x.dtype),
        grid_spec=pltpu.PrefetchScalarGridSpec(
            num_scalar_prefetch=0,
            grid=grid,
            in_specs=[
                pl.BlockSpec((b_tile, r_tile, L), lambda r, b: (b, r, 0)),  # x tile
                pl.BlockSpec((1, r_tile, L), lambda r, b: (0, r, 0)),       # pe tile
            ],
            out_specs=pl.BlockSpec((b_tile, r_tile, L), lambda r, b: (b, r, 0)),
        ),
        compiler_params=pltpu.CompilerParams(
            dimension_semantics=("parallel", "parallel"),
            vmem_limit_bytes=vmem_limit,
        ),
        input_output_aliases=({0: 0} if donate_x else {}),
    )(xv, pev)

    return out.reshape(B, S, E)


if __name__ == "__main__":
    key = jax.random.PRNGKey(0)
    k1, k2 = jax.random.split(key)

    # --- small demo shape (matches the PyTorch module's toy usage) ---
    batch, seq_len, embed_dim = 2, 8, 32
    x = jax.random.normal(k1, (batch, seq_len, embed_dim), dtype=jnp.float32)
    pe = make_positional_encoding(embed_dim, seq_len, dtype=jnp.float32)

    out = positional_encoding_forward(x, pe)
    out = jax.block_until_ready(out)

    ref = x + pe
    assert out.shape == (batch, seq_len, embed_dim)
    assert jnp.allclose(out, ref, atol=1e-6), "mismatch vs reference (small)"

    # --- second check: multi-step grid with a partial last row tile ---
    b2, s2, e2 = 3, 384, 192
    x2 = jax.random.normal(k2, (b2, s2, e2), dtype=jnp.float32)
    pe2 = make_positional_encoding(e2, s2, dtype=jnp.float32)
    out2 = positional_encoding_forward(x2, pe2, target_tile_bytes=64 * 1024)
    out2 = jax.block_until_ready(out2)
    assert jnp.allclose(out2, x2 + pe2, atol=1e-6), "mismatch vs reference (tiled)"

    print("KERNEL_OK")
</pallas_src>

<mosaic_0001>
module attributes {stable_mosaic.version = 11 : i64} {
  func.func @_add_pe_kernel(%arg0: i32, %arg1: i32, %arg2: memref<2x1x256xf32, #tpu.memory_space<vmem>>, %arg3: memref<1x1x256xf32, #tpu.memory_space<vmem>>, %arg4: memref<2x1x256xf32, #tpu.memory_space<vmem>>) attributes {dimension_semantics = [#tpu.dimension_semantics<parallel>, #tpu.dimension_semantics<parallel>], iteration_bounds = array<i64: 1, 1>, scalar_prefetch = 0 : i64, scratch_operands = 0 : i64, tpu.core_type = #tpu.core_type<tc>, window_params = [{transform_indices = @transform_0, window_bounds = array<i64: 2, 1, 256>}, {transform_indices = @transform_1, window_bounds = array<i64: 1, 1, 256>}, {transform_indices = @transform_2, window_bounds = array<i64: 2, 1, 256>}]} {
    %c0 = arith.constant 0 : index
    %c0_0 = arith.constant 0 : index
    %c0_1 = arith.constant 0 : index
    %0 = vector.load %arg2[%c0, %c0_0, %c0_1] : memref<2x1x256xf32, #tpu.memory_space<vmem>>, vector<2x1x256xf32>
    %c0_2 = arith.constant 0 : index
    %c0_3 = arith.constant 0 : index
    %c0_4 = arith.constant 0 : index
    %1 = vector.load %arg3[%c0_2, %c0_3, %c0_4] : memref<1x1x256xf32, #tpu.memory_space<vmem>>, vector<1x1x256xf32>
    %2 = vector.broadcast %1 : vector<1x1x256xf32> to vector<2x1x256xf32>
    %3 = arith.addf %0, %2 : vector<2x1x256xf32>
    %c0_5 = arith.constant 0 : index
    %c0_6 = arith.constant 0 : index
    %c0_7 = arith.constant 0 : index
    %4 = vector.load %arg4[%c0_5, %c0_6, %c0_7] : memref<2x1x256xf32, #tpu.memory_space<vmem>>, vector<2x1x256xf32>
    tpu.vector_store %arg4[%c0_5, %c0_6, %c0_7], %3 {strides = array<i32>} : memref<2x1x256xf32, #tpu.memory_space<vmem>>, vector<2x1x256xf32>,
    return
  }
  func.func @transform_0(%arg0: i32, %arg1: i32) -> (i32, i32, i32) {
    %c0_i32 = arith.constant 0 : i32
    %c0_i32_0 = arith.constant 0 : i32
    return %arg1, %arg0, %c0_i32 : i32, i32, i32
  }
  func.func @transform_1(%arg0: i32, %arg1: i32) -> (i32, i32, i32) {
    %c0_i32 = arith.constant 0 : i32
    %c0_i32_0 = arith.constant 0 : i32
    %c0_i32_1 = arith.constant 0 : i32
    return %c0_i32, %arg0, %c0_i32_0 : i32, i32, i32
  }
  func.func @transform_2(%arg0: i32, %arg1: i32) -> (i32, i32, i32) {
    %c0_i32 = arith.constant 0 : i32
    %c0_i32_0 = arith.constant 0 : i32
    return %arg1, %arg0, %c0_i32 : i32, i32, i32
  }
}

</mosaic_0001>

<bundles_post_ra>
// kernel: tpu_custom_call.1
= control target key start
LH: loop header
LB: loop body
LE: loop exit
PB: predicated region body
PF: predicated region fallthrough
CT: control target
= control target key end

     0   :  { %7 = vsyncpa [#allocation3], 0  ;;  %s185_s0 = inlined_call_operand.hbm [shape: f32[2,1,256], index: 0, kind: input, shape index: {}]   ;;  %s186_s1 = inlined_call_operand.hbm [shape: f32[1,1,256], index: 1, kind: input, shape index: {}]   ;;  %s187_s2 = inlined_call_operand.hbm [shape: f32[2,1,256], index: 2, kind: output, shape index: {}]  }
   0x1   :  { %8 = vsyncpa [#allocation6], 0 }
   0x2   :  { %9 = vsyncpa [#allocation4], 0  ;;  %s14_s11 = sshll.u32 %s185_s0, 4  ;;  %s156_s12 = smov [#allocation2]   ;;  %s15_s11 = int_to_ptr.hbm [resolvable:$true] %s14_s11 }
   0x3   :  { %s16_s13 = sshll.u32 %s156_s12, 4  ;;  %s28_s16 = sshll.u32 %s186_s1, 4  ;;  %s17_s13 = int_to_ptr.vmem [resolvable:$true] %s16_s13  ;;  %s29_s16 = int_to_ptr.hbm [resolvable:$true] %s28_s16 }
   0x4   :  { %s157_s17 = smov 32   ;;  %s158_s18 = smov 2  }
   0x5   :  { %22 = dma.hbm_to_vmem [thread:$0]  %s15_s11, 64, %s17_s13, [#allocation3], %s157_s17, %s157_s17, %s158_s18  }
   0x6   :  { %s159_s19 = smov [#allocation5]  }
   0x7   :  { %s30_s20 = sshll.u32 %s159_s19, 4  ;;  %s31_s20 = int_to_ptr.vmem [resolvable:$true] %s30_s20 }
   0x8   :  { %33 = dma.hbm_to_vmem [thread:$0]  %s29_s16, 32, %s31_s20, [#allocation6]  }
   0x9   :  { %150 = dma.done.wait [#allocation3], 64  }
   0xa   :  { %151 = vsyncadd [#allocation3], 4294967232 }
   0xb   :  { %152 = dma.done.wait [#allocation6], 32  }
   0xc   :  { %153 = vsyncadd [#allocation6], 4294967264  ;;  %v47_v0 = vlaneseq  ;;  %s160_s0 = smov [#allocation7]   ;;  %s59_s1 = sshll.u32 %s187_s2, 4  ;;  %v42_v1 = vld [vmem:[#allocation2] sm:$0x3]  ;;  %s60_s1 = int_to_ptr.hbm [resolvable:$true] %s59_s1 }
   0xd   :  { %s57_s21 = sshll.u32 %s160_s0, 4  ;;  %v44_v2 = vld [vmem:[#allocation5] sm:$0x3]  ;;  %v43_v3 = vld [vmem:[#allocation2 + $0x2] sm:$0x3]  ;;  %s58_s21 = int_to_ptr.vmem [resolvable:$true] %s57_s21 }
   0xe   :  { %vm49_vm0 = vcmp.lt.s32.totalorder %v47_v0, 256  ;;  %v45_v4 = vadd.f32 %v44_v2, %v42_v1  ;;  %v46_v5 = vadd.f32 %v44_v2, %v43_v3 }
  0x10   :  { %51 = vst.msk [vmem:[#allocation7] sm:$0x3] %vm49_vm0, %v45_v4 }
  0x11   :  { %52 = vst.msk [vmem:[#allocation7 + $0x2] sm:$0x3] %vm49_vm0, %v46_v5 }
  0x12   :  { %65 = dma.vmem_to_hbm [thread:$0]  %s58_s21, 64, %s60_s1, [#allocation4], %s157_s17, %s157_s17, %s158_s18  }
  0x13   :  { %154 = dma.done.wait [#allocation4], 64  }
  0x14   :  { %155 = vsyncadd [#allocation4], 4294967232 }
  0x15   :  { %70 = vsyncpa [#allocation3], 1 }
  0x16   :  { %71 = vsyncpa [#allocation6], 1 }
  0x17   :  { %72 = vsyncpa [#allocation4], 1 }

</bundles_post_ra>
